<compile_context>
chip_gen: v6e
topology: v6e:2x2x1
jax: 0.10.0
libtpu: 0.0.40
codegen_flags: <defaults>
</compile_context>

<pallas_src>
import jax
import jax.numpy as jnp
from jax.experimental import pallas as pl
from jax.experimental.pallas import tpu as pltpu

INV_SQRT2 = 0.7071067811865476
LANES = 128
SUBLANES = 8
DEFAULT_TILE_ROWS = 1024   # aligned path: sublane-rows per tile (x 128 lanes)
FLAT_TILE_ROWS = 768       # flat path cap: 768*128 lanes -> ~12 MiB double-buffered


def _round_up(v, m):
    return ((v + m - 1) // m) * m


def _split_gelu_cat_kernel(x_ref, o_ref):
    # x_ref: (6, ...) input tile, o_ref: (5, ...) output tile (same trailing dims).
    x = lambda i: x_ref[pl.ds(i, 1)]
    v10 = jax.lax.erf(x(1) * INV_SQRT2) + 1.0
    o_ref[pl.ds(0, 1)] = x(0) * 0.5
    o_ref[pl.ds(1, 1)] = x(2) * v10
    o_ref[pl.ds(2, 1)] = x(3) * v10
    o_ref[pl.ds(3, 1)] = x(4) * v10
    o_ref[pl.ds(4, 1)] = x(5) * v10


def _run_aligned(x3, n, s, tile_rows):
    """s % 128 == 0: per-channel lane-dense (tr, 128) tiles."""
    sr = s // LANES
    min_tiles = 2 if n < 2 else 1                 # keep both v7x TCs fed
    n_tiles = max(pl.cdiv(sr, tile_rows), min_tiles)
    tr = _round_up(pl.cdiv(sr, n_tiles), SUBLANES)
    if tr >= sr:
        tr, n_tiles = sr, 1                       # full extent (any sr is legal)
    else:
        n_tiles = pl.cdiv(sr, tr)                 # ragged last tile is masked

    x4 = x3.reshape(n, 6, sr, LANES)              # free reshape
    out4 = pl.pallas_call(
        _split_gelu_cat_kernel,
        out_shape=jax.ShapeDtypeStruct((n, 5, sr, LANES), x3.dtype),
        grid=(n, n_tiles),
        in_specs=[pl.BlockSpec((None, 6, tr, LANES), lambda b, i: (b, 0, i, 0))],
        out_specs=pl.BlockSpec((None, 5, tr, LANES), lambda b, i: (b, 0, i, 0)),
        compiler_params=pltpu.CompilerParams(
            dimension_semantics=("parallel", "parallel")),
    )(x4)
    return out4.reshape(n, 5, s)


def _run_flat(x3, n, s, tile_rows):
    """s % 128 != 0: flat (N, 6, S) layout, 128-multiple lane blocks, masked tail."""
    ch_max = min(tile_rows, FLAT_TILE_ROWS) * LANES
    min_tiles = 2 if n < 2 else 1
    n_tiles = max(pl.cdiv(s, ch_max), min_tiles)
    ch = _round_up(pl.cdiv(s, n_tiles), LANES)
    if ch >= s:
        ch, n_tiles = s, 1                        # full extent (any s is legal)
    else:
        n_tiles = pl.cdiv(s, ch)                  # ragged last block is masked

    return pl.pallas_call(
        _split_gelu_cat_kernel,
        out_shape=jax.ShapeDtypeStruct((n, 5, s), x3.dtype),
        grid=(n, n_tiles),
        in_specs=[pl.BlockSpec((None, 6, ch), lambda b, i: (b, 0, i))],
        out_specs=pl.BlockSpec((None, 5, ch), lambda b, i: (b, 0, i)),
        compiler_params=pltpu.CompilerParams(
            dimension_semantics=("parallel", "parallel")),
    )(x3)


def split_gelu_cat(x, *, tile_rows=DEFAULT_TILE_ROWS):
    """x: (N, 6, D, H, W) -> (N, 5, D, H, W)."""
    n, c, d, h, w = x.shape
    assert c == 6, "module semantics require 6 channel slices of size 1"
    s = d * h * w
    x3 = x.reshape(n, c, s)                       # free reshape (contiguous collapse)
    if s % LANES == 0:
        out3 = _run_aligned(x3, n, s, tile_rows)
    else:
        out3 = _run_flat(x3, n, s, tile_rows)
    return out3.reshape(n, 5, d, h, w)


def _reference(x):
    v1, v2, v3, v4, v5, v6 = [x[:, i:i + 1] for i in range(6)]
    v7 = v1 * 0.5
    v10 = jax.lax.erf(v2 * INV_SQRT2) + 1.0
    return jnp.concatenate([v7, v3 * v10, v4 * v10, v5 * v10, v6 * v10], axis=1)


def _check(x, expected_shape):
    out = split_gelu_cat(x)
    jax.block_until_ready(out)
    ref = _reference(x)
    assert out.shape == expected_shape, out.shape
    assert jnp.allclose(out, ref, atol=1e-5, rtol=1e-5)


if __name__ == "__main__":
    key = jax.random.PRNGKey(0)
    k1, k2, k3, k4 = jax.random.split(key, 4)

    # 1) Aligned spatial (8*8*8 = 512), batch=2: aligned path, batch grid axis.
    _check(jax.random.normal(k1, (2, 6, 8, 8, 8), dtype=jnp.float32), (2, 5, 8, 8, 8))

    # 2) Non-128-multiple spatial (4*6*5 = 120), batch=2: flat path, single lane block.
    _check(jax.random.normal(k2, (2, 6, 4, 6, 5), dtype=jnp.float32), (2, 5, 4, 6, 5))

    # 3) Aligned, batch=1: forces >=2 spatial tiles (v7x dual-TC rule).
    _check(jax.random.normal(k3, (1, 6, 16, 16, 16), dtype=jnp.float32), (1, 5, 16, 16, 16))

    # 4) Unaligned (8*8*9 = 576), batch=1: flat path with a masked ragged last block.
    _check(jax.random.normal(k4, (1, 6, 8, 8, 9), dtype=jnp.float32), (1, 5, 8, 8, 9))

    print("KERNEL_OK")
</pallas_src>

<mosaic_0001>
module attributes {stable_mosaic.version = 11 : i64} {
  func.func @_split_gelu_cat_kernel(%arg0: i32, %arg1: i32, %arg2: memref<1x6x4x128xf32, #tpu.memory_space<vmem>>, %arg3: memref<1x5x4x128xf32, #tpu.memory_space<vmem>>) attributes {dimension_semantics = [#tpu.dimension_semantics<parallel>, #tpu.dimension_semantics<parallel>], iteration_bounds = array<i64: 2, 1>, scalar_prefetch = 0 : i64, scratch_operands = 0 : i64, tpu.core_type = #tpu.core_type<tc>, window_params = [{transform_indices = @transform_0, window_bounds = array<i64: 1, 6, 4, 128>}, {transform_indices = @transform_1, window_bounds = array<i64: 1, 5, 4, 128>}]} {
    %c0 = arith.constant 0 : index
    %c1 = arith.constant 1 : index
    %c0_0 = arith.constant 0 : index
    %c0_1 = arith.constant 0 : index
    %0 = vector.load %arg2[%c0, %c1, %c0_0, %c0_1] : memref<1x6x4x128xf32, #tpu.memory_space<vmem>>, vector<1x1x4x128xf32>
    %1 = vector.shape_cast %0 : vector<1x1x4x128xf32> to vector<1x4x128xf32>
    %cst = arith.constant 0.707106769 : f32
    %2 = vector.broadcast %cst : f32 to vector<1x4x128xf32>
    %3 = arith.mulf %1, %2 : vector<1x4x128xf32>
    %4 = math.erf %3 : vector<1x4x128xf32>
    %cst_2 = arith.constant 1.000000e+00 : f32
    %5 = vector.broadcast %cst_2 : f32 to vector<1x4x128xf32>
    %6 = arith.addf %4, %5 : vector<1x4x128xf32>
    %c0_3 = arith.constant 0 : index
    %c0_4 = arith.constant 0 : index
    %c0_5 = arith.constant 0 : index
    %c0_6 = arith.constant 0 : index
    %7 = vector.load %arg2[%c0_3, %c0_4, %c0_5, %c0_6] : memref<1x6x4x128xf32, #tpu.memory_space<vmem>>, vector<1x1x4x128xf32>
    %8 = vector.shape_cast %7 : vector<1x1x4x128xf32> to vector<1x4x128xf32>
    %cst_7 = arith.constant 5.000000e-01 : f32
    %9 = vector.broadcast %cst_7 : f32 to vector<1x4x128xf32>
    %10 = arith.mulf %8, %9 : vector<1x4x128xf32>
    %c0_8 = arith.constant 0 : index
    %c0_9 = arith.constant 0 : index
    %c0_10 = arith.constant 0 : index
    %c0_11 = arith.constant 0 : index
    %11 = vector.load %arg3[%c0_8, %c0_9, %c0_10, %c0_11] : memref<1x5x4x128xf32, #tpu.memory_space<vmem>>, vector<1x1x4x128xf32>
    %12 = vector.shape_cast %11 : vector<1x1x4x128xf32> to vector<1x4x128xf32>
    %13 = vector.shape_cast %10 : vector<1x4x128xf32> to vector<1x1x4x128xf32>
    tpu.vector_store %arg3[%c0_8, %c0_9, %c0_10, %c0_11], %13 {strides = array<i32>} : memref<1x5x4x128xf32, #tpu.memory_space<vmem>>, vector<1x1x4x128xf32>,
    %c0_12 = arith.constant 0 : index
    %c2 = arith.constant 2 : index
    %c0_13 = arith.constant 0 : index
    %c0_14 = arith.constant 0 : index
    %14 = vector.load %arg2[%c0_12, %c2, %c0_13, %c0_14] : memref<1x6x4x128xf32, #tpu.memory_space<vmem>>, vector<1x1x4x128xf32>
    %15 = vector.shape_cast %14 : vector<1x1x4x128xf32> to vector<1x4x128xf32>
    %16 = arith.mulf %15, %6 : vector<1x4x128xf32>
    %c0_15 = arith.constant 0 : index
    %c1_16 = arith.constant 1 : index
    %c0_17 = arith.constant 0 : index
    %c0_18 = arith.constant 0 : index
    %17 = vector.load %arg3[%c0_15, %c1_16, %c0_17, %c0_18] : memref<1x5x4x128xf32, #tpu.memory_space<vmem>>, vector<1x1x4x128xf32>
    %18 = vector.shape_cast %17 : vector<1x1x4x128xf32> to vector<1x4x128xf32>
    %19 = vector.shape_cast %16 : vector<1x4x128xf32> to vector<1x1x4x128xf32>
    tpu.vector_store %arg3[%c0_15, %c1_16, %c0_17, %c0_18], %19 {strides = array<i32>} : memref<1x5x4x128xf32, #tpu.memory_space<vmem>>, vector<1x1x4x128xf32>,
    %c0_19 = arith.constant 0 : index
    %c3 = arith.constant 3 : index
    %c0_20 = arith.constant 0 : index
    %c0_21 = arith.constant 0 : index
    %20 = vector.load %arg2[%c0_19, %c3, %c0_20, %c0_21] : memref<1x6x4x128xf32, #tpu.memory_space<vmem>>, vector<1x1x4x128xf32>
    %21 = vector.shape_cast %20 : vector<1x1x4x128xf32> to vector<1x4x128xf32>
    %22 = arith.mulf %21, %6 : vector<1x4x128xf32>
    %c0_22 = arith.constant 0 : index
    %c2_23 = arith.constant 2 : index
    %c0_24 = arith.constant 0 : index
    %c0_25 = arith.constant 0 : index
    %23 = vector.load %arg3[%c0_22, %c2_23, %c0_24, %c0_25] : memref<1x5x4x128xf32, #tpu.memory_space<vmem>>, vector<1x1x4x128xf32>
    %24 = vector.shape_cast %23 : vector<1x1x4x128xf32> to vector<1x4x128xf32>
    %25 = vector.shape_cast %22 : vector<1x4x128xf32> to vector<1x1x4x128xf32>
    tpu.vector_store %arg3[%c0_22, %c2_23, %c0_24, %c0_25], %25 {strides = array<i32>} : memref<1x5x4x128xf32, #tpu.memory_space<vmem>>, vector<1x1x4x128xf32>,
    %c0_26 = arith.constant 0 : index
    %c4 = arith.constant 4 : index
    %c0_27 = arith.constant 0 : index
    %c0_28 = arith.constant 0 : index
    %26 = vector.load %arg2[%c0_26, %c4, %c0_27, %c0_28] : memref<1x6x4x128xf32, #tpu.memory_space<vmem>>, vector<1x1x4x128xf32>
    %27 = vector.shape_cast %26 : vector<1x1x4x128xf32> to vector<1x4x128xf32>
    %28 = arith.mulf %27, %6 : vector<1x4x128xf32>
    %c0_29 = arith.constant 0 : index
    %c3_30 = arith.constant 3 : index
    %c0_31 = arith.constant 0 : index
    %c0_32 = arith.constant 0 : index
    %29 = vector.load %arg3[%c0_29, %c3_30, %c0_31, %c0_32] : memref<1x5x4x128xf32, #tpu.memory_space<vmem>>, vector<1x1x4x128xf32>
    %30 = vector.shape_cast %29 : vector<1x1x4x128xf32> to vector<1x4x128xf32>
    %31 = vector.shape_cast %28 : vector<1x4x128xf32> to vector<1x1x4x128xf32>
    tpu.vector_store %arg3[%c0_29, %c3_30, %c0_31, %c0_32], %31 {strides = array<i32>} : memref<1x5x4x128xf32, #tpu.memory_space<vmem>>, vector<1x1x4x128xf32>,
    %c0_33 = arith.constant 0 : index
    %c5 = arith.constant 5 : index
    %c0_34 = arith.constant 0 : index
    %c0_35 = arith.constant 0 : index
    %32 = vector.load %arg2[%c0_33, %c5, %c0_34, %c0_35] : memref<1x6x4x128xf32, #tpu.memory_space<vmem>>, vector<1x1x4x128xf32>
    %33 = vector.shape_cast %32 : vector<1x1x4x128xf32> to vector<1x4x128xf32>
    %34 = arith.mulf %33, %6 : vector<1x4x128xf32>
    %c0_36 = arith.constant 0 : index
    %c4_37 = arith.constant 4 : index
    %c0_38 = arith.constant 0 : index
    %c0_39 = arith.constant 0 : index
    %35 = vector.load %arg3[%c0_36, %c4_37, %c0_38, %c0_39] : memref<1x5x4x128xf32, #tpu.memory_space<vmem>>, vector<1x1x4x128xf32>
    %36 = vector.shape_cast %35 : vector<1x1x4x128xf32> to vector<1x4x128xf32>
    %37 = vector.shape_cast %34 : vector<1x4x128xf32> to vector<1x1x4x128xf32>
    tpu.vector_store %arg3[%c0_36, %c4_37, %c0_38, %c0_39], %37 {strides = array<i32>} : memref<1x5x4x128xf32, #tpu.memory_space<vmem>>, vector<1x1x4x128xf32>,
    return
  }
  func.func @transform_0(%arg0: i32, %arg1: i32) -> (i32, i32, i32, i32) {
    %c0_i32 = arith.constant 0 : i32
    %c0_i32_0 = arith.constant 0 : i32
    %c0_i32_1 = arith.constant 0 : i32
    return %arg0, %c0_i32, %arg1, %c0_i32_0 : i32, i32, i32, i32
  }
  func.func @transform_1(%arg0: i32, %arg1: i32) -> (i32, i32, i32, i32) {
    %c0_i32 = arith.constant 0 : i32
    %c0_i32_0 = arith.constant 0 : i32
    %c0_i32_1 = arith.constant 0 : i32
    return %arg0, %c0_i32, %arg1, %c0_i32_0 : i32, i32, i32, i32
  }
}

</mosaic_0001>

<bundles_post_ra>
// kernel: tpu_custom_call.1
= control target key start
LH: loop header
LB: loop body
LE: loop exit
PB: predicated region body
PF: predicated region fallthrough
CT: control target
= control target key end

     0   :  { %6 = vsyncpa [#allocation3], 0  ;;  %s644_s0 = inlined_call_operand.hbm [shape: f32[2,6,4,128], index: 0, kind: input, shape index: {}]   ;;  %s645_s1 = inlined_call_operand.hbm [shape: f32[2,5,4,128], index: 1, kind: output, shape index: {}]  }
   0x1   :  { %8 = vsyncpa [#allocation3 + $0x1], 0 }
   0x2   :  { %9 = vsyncpa [#allocation4], 0 }
   0x3   :  { %11 = vsyncpa [#allocation4 + $0x1], 0  ;;  %s497_s6 = smov 0   ;;  %s499_s7 = smov 0  }
   0x4   :  { %s501_s8 = smov 0   ;;  %s503_s9 = smov 0  }
   0x5   :  { %s505_s10 = smov 0   ;;  %s507_s11 = smov 0  }
   0x6 LB: > { %s280_s12 = sadd.s32 4294967295, %s479_s11   ;;  %s281_s13 = sadd.s32 4294967294, %s479_s11   ;;  %s479_s11 = sphi %s507_s11, %s17_s11   ;;  %s475_s10 = sphi %s505_s10, %s656_s10   ;;  %s471_s9 = sphi %s503_s9, %s655_s9   ;;  %s467_s8 = sphi %s501_s8, %s654_s8   ;;  %s463_s7 = sphi %s499_s7, %s653_s7   ;;  %s459_s6 = sphi %s497_s6, %s652_s6  }
   0x7   : > { %s29_s14 = sadd.s32 1, %s475_s10  ;;  %s38_s15 = sadd.s32 1, %s467_s8 }
   0x8   : > { %p31_p0 = scmp.ge.s32.totalorder %s29_s14, 2  ;;  %p45_p1 = scmp.ne.s32.totalorder %s467_s8, %s463_s7 }
   0x9   : > { %p46_p2 = scmp.eq.s32.totalorder %s479_s11, 0  ;;  %p51_p3 = scmp.ne.s32.totalorder %s463_s7, %s459_s6 }
   0xa   : > { %s658_s14 = smov (%p31_p0, %s29_s14), 0  ;;  %p52_p5 = scmp.eq.s32.totalorder %s280_s12, 0 }
   0xb   : > { %p538_p4 = por %p46_p2, %p45_p1  ;;  %s33_s17 = ssub.s32 %s475_s10, %s658_s14 }
   0xc   : > { %p77_p6 = scmp.eq.s32.totalorder %s280_s12, 1  ;;  %p36_p7 = scmp.eq.s32.totalorder %s33_s17, 0 }
   0xd   : > { %p544_p8 = por %p52_p5, %p51_p3  ;;  %p83_p10 = scmp.eq.s32.totalorder %s281_s13, 1 }
   0xe   : > { %p548_p9 = por %p77_p6, %p45_p1  ;;  %p315_p13 = scmp.lt.s32.totalorder %s479_s11, 2 }
   0xf   : > { %s553_s20 = scalar_select %p36_p7, %s467_s8, %s38_s15  }
  0x10   : > { %p555_p11 = por %p83_p10, %p51_p3  ;;  %s103_s22 = sand.u32 1, %s467_s8  }
  0x11   : > { %s298_s23 = smul.u32 24, %s103_s22  ;;  %p565_p0 = pnand %p315_p13, %p538_p4 }
  0x12   : > { %s299_s24 = smul.u32 384, %s475_s10  ;;  %p285_p1 = scmp.ge.s32.totalorder %s479_s11, 1 }
  0x13   : > { %s107_s29 = scalar_lea.vmem [#allocation2], %s298_s23  ;;  %s104_s2 = scalar_lea.sflag [#allocation3], %s103_s22 }
  0x14   : > { %s114_s28 = scalar_lea.hbm %s644_s0, %s299_s24  ;;  %s115_s30 = sshll.u32 %s107_s29, 4  ;;  %s116_s30 = int_to_ptr.vmem [resolvable:$true] %s115_s30 }
  0x15   : > { %p373_p2 = pneg %p565_p0  ;;  %s384_s3 = scalar_lea.vmem %s116_s30, 384 }
  0x16   : > { %p385_p3 = scmp.ne.s32.totalorder %s116_s30, %s384_s3  ;;  %s481_s4 = smov [#allocation2]  }
  0x17   : > { %s389_s5 = sshll.u32 %s481_s4, 4  ;;  %s390_s5 = int_to_ptr.vmem [resolvable:$false] %s389_s5 }
  0x18   : > { %p387_p5 = pnand %p385_p3, %p373_p2  ;;  %s391_s12 = scalar_lea.vmem %s390_s5, 768 }
  0x19   : > { %p392_p4 = scmp.lt.s32.totalorder %s116_s30, %s390_s5  ;;  %p393_p7 = scmp.lt.s32.totalorder %s391_s12, %s384_s3 }
  0x1a   : > { %p388_p6 = pneg %p387_p5 }
  0x1b   : > { %p394_p10 = por %p393_p7, %p392_p4 }
  0x1d   : > { %p395_p13 = pnand %p394_p10, %p388_p6 }
  0x1f   : > { %398 = shalt.err (!%p395_p13)
}
  0x20   : > { %s482_s13 = smov 64   ;;  %s483_s15 = smov 4  }
  0x21   : > { %310 = dma.hbm_to_vmem [thread:$0]  (!%p565_p0), %s114_s28, 384, %s116_s30, %s104_s2, %s482_s13, %s482_s13, %s483_s15  }
  0x22   : > { %p123_p12 = scmp.lt.s32.totalorder %s479_s11, 3 }
  0x24   : > { %p124_p2 = pnand %p285_p1, %p123_p12 }
  0x25   : > { %s581_s16 = sand.u32 (!%p124_p2), 1, %s463_s7  }
  0x26   : > { %127 = sbr.rel (%p124_p2) target bundleno = 80 (0x50), region = 24  ;;  %s130_s22 = scalar_lea.sflag (!%p124_p2), [#allocation3], %s581_s16 }
  0x27   : > { %s300_s17 = smul.u32 (!%p124_p2), 24, %s581_s16 }
  0x29   : > { %s133_s23 = scalar_lea.vmem (!%p124_p2), [#allocation2], %s300_s17 }
  0x2b   : > { %450 = dma.done.wait (%p544_p8), %s130_s22, 384  }
  0x2c   : > { %452 = vsyncadd (%p544_p8), %s130_s22, 4294966912  ;;  %s301_s24 = smul.u32 20, %s581_s16  ;;  %v157_v0 = vld [vmem:[%s133_s23] sm:$0xf]  ;;  %v286_v1 = vld [vmem:[%s133_s23 + $0x4] sm:$0xf] }
  0x2d   : > { %v158_v2 = vmul.f32 0.5, %v157_v0  ;;  %v154_v3 = vmul.f32 0.70710677, %v286_v1  ;;  %v287_v4 = vld [vmem:[%s133_s23 + $0x8] sm:$0xf]  ;;  %s302_s27 = smul.u32 320, %s471_s9 }
  0x2e   : > { %s151_s25 = scalar_lea.vmem [#allocation5], %s301_s24  ;;  %v289_v6 = vld [vmem:[%s133_s23 + $0xc] sm:$0xf]  ;;  %v291_v7 = vld [vmem:[%s133_s23 + $0x10] sm:$0xf]  ;;  %s181_s29 = scalar_lea.sflag [#allocation4], %s581_s16 }
  0x2f   : > { %159 = vst [vmem:[%s151_s25] sm:$0xf] %v158_v2  ;;  %369 = verf.f32 %v154_v3  ;;  %s195_s26 = sshll.u32 %s151_s25, 4  ;;  %v293_v8 = vld [vmem:[%s133_s23 + $0x14] sm:$0xf]  ;;  %s596_s9 = scalar_lea.hbm %s645_s1, %s302_s27  ;;  %s591_s26 = int_to_ptr.vmem [resolvable:$true] %s195_s26 }
  0x30   : > { %s399_s30 = scalar_lea.vmem %s591_s26, 320  ;;  %s484_s2 = smov [#allocation5]  }
  0x31   : > { %p400_p8 = scmp.ne.s32.totalorder %s591_s26, %s399_s30  ;;  %s403_s3 = sshll.u32 %s484_s2, 4  ;;  %s404_s3 = int_to_ptr.vmem [resolvable:$false] %s403_s3 }
  0x32   : > { %s405_s4 = scalar_lea.vmem %s404_s3, 640  ;;  %p406_p1 = scmp.lt.s32.totalorder %s591_s26, %s404_s3 }
  0x33   : > { %p401_p12 = pnand %p400_p8, %p548_p9  ;;  %p407_p3 = scmp.lt.s32.totalorder %s405_s4, %s399_s30 }
  0x35   : > { %p402_p0 = pneg %p401_p12  ;;  %p408_p5 = por %p407_p3, %p406_p1 }
  0x37   : > { %p409_p6 = pnand %p408_p5, %p402_p0 }
  0x3c   : > { %v370_v5 = vpop.eup %369 }
  0x3d   : > { %v156_v9 = vadd.f32 1.0, %v370_v5 }
  0x3f   : > { %v162_v10 = vmul.f32 %v287_v4, %v156_v9  ;;  %v167_v11 = vmul.f32 %v289_v6, %v156_v9  ;;  %v172_v12 = vmul.f32 %v291_v7, %v156_v9  ;;  %v177_v13 = vmul.f32 %v293_v8, %v156_v9 }
  0x41   : > { %288 = vst [vmem:[%s151_s25 + $0x4] sm:$0xf] %v162_v10  ;;  %290 = vst [vmem:[%s151_s25 + $0x8] sm:$0xf] %v167_v11 }
  0x42   : > { %292 = vst [vmem:[%s151_s25 + $0xc] sm:$0xf] %v172_v12  ;;  %294 = vst [vmem:[%s151_s25 + $0x10] sm:$0xf] %v177_v13 }
  0x43   : > { %412 = shalt.err (!%p409_p6)
}
  0x44   : > { %s413_s5 = scalar_lea.hbm %s596_s9, 320  ;;  %s417_s15 = scalar_lea.hbm %s645_s1, 640 }
  0x45   : > { %p414_p4 = scmp.ne.s32.totalorder %s596_s9, %s413_s5  ;;  %p418_p13 = scmp.lt.s32.totalorder %s596_s9, %s645_s1 }
  0x46   : > { %p419_p2 = scmp.lt.s32.totalorder %s417_s15, %s413_s5 }
  0x47   : > { %p415_p7 = pnand %p414_p4, %p548_p9 }
  0x48   : > { %p420_p8 = por %p419_p2, %p418_p13 }
  0x49   : > { %p416_p10 = pneg %p415_p7 }
  0x4b   : > { %p421_p12 = pnand %p420_p8, %p416_p10 }
  0x4d   : > { %424 = shalt.err (!%p421_p12)
}
  0x4e   : > { %s485_s23 = smov 64   ;;  %s486_s24 = smov 4  }
  0x4f   : > { %305 = dma.vmem_to_hbm [thread:$0]  (%p548_p9), %s591_s26, 320, %s596_s9, %s181_s29, %s485_s23, %s485_s23, %s486_s24  }
  0x50 PF: > { %s210_s25 = sand.u32 1, %s459_s6   ;;  %p651_p0 = scmp.ge.s32.totalorder %s479_s11, 2 }
  0x51   : > { %s211_s27 = scalar_lea.sflag [#allocation4], %s210_s25 }
  0x52   : > { %p312_p1 = pnand %p651_p0, %p555_p11 }
  0x54   : > { %p313_p3 = pneg %p312_p1 }
  0x56   : > { %454 = dma.done.wait (%p313_p3), %s211_s27, 320  }
  0x57   : > { %456 = vsyncadd (%p313_p3), %s211_s27, 4294966976  ;;  %s17_s11 = sadd.s32 1, %s479_s11   ;;  %s652_s6 = smov %s463_s7 }
  0x58   : > { %p14_p5 = scmp.ge.s32.totalorder %s17_s11, 4   ;;  %s653_s7 = smov %s467_s8 }
  0x59   : > { %s654_s8 = smov %s553_s20  ;;  %s655_s9 = smov %s475_s10 }
  0x5a   : > { %s656_s10 = smov %s658_s14  ;;  %16 = sbr.rel (!%p14_p5) target bundleno = 6 (0x6), region = 78 }
  0x5f   :  { %216 = vsyncpa [#allocation3], 1 }
  0x60   :  { %218 = vsyncpa [#allocation3 + $0x1], 1 }
  0x61   :  { %219 = vsyncpa [#allocation4], 1 }
  0x62   :  { %221 = vsyncpa [#allocation4 + $0x1], 1 }

</bundles_post_ra>
